<compile_context>
chip_gen: v7x
topology: tpu7x:2x2x1
jax: 0.10.0
libtpu: 0.0.40
codegen_flags: <defaults>
</compile_context>

<pallas_src>
import functools

import jax
import jax.numpy as jnp
from jax.experimental import pallas as pl
from jax.experimental.pallas import tpu as pltpu

SLOPE = 0.1           # nn.LeakyReLU(negative_slope=0.1)
TARGET_LANE_TILE = 16384   # tokens per grid step (multiple of 128), capped below


def _fpn_denoise_kernel(x_ref, w1_ref, b1_ref, w2_ref, b2_ref, w3_ref, b3_ref,
                        w4_ref, b4_ref, o_ref, *, slope):
    # LeakyReLU with 0 < slope < 1 is exactly max(v, slope*v): 2 VPU ops, no select.
    def lrelu(v):
        return jnp.maximum(v, slope * v)

    x = x_ref[...]                                                        # (2, T)
    h = lrelu(jnp.dot(w1_ref[...], x, preferred_element_type=jnp.float32) + b1_ref[...])
    h = lrelu(jnp.dot(w2_ref[...], h, preferred_element_type=jnp.float32) + b2_ref[...])
    h = lrelu(jnp.dot(w3_ref[...], h, preferred_element_type=jnp.float32) + b3_ref[...])
    h = lrelu(jnp.dot(w4_ref[...], h, preferred_element_type=jnp.float32) + b4_ref[...])
    o_ref[...] = h                                                        # (1, T)


def _pick_lane_tile(hw, batch, target=TARGET_LANE_TILE):
    """Largest multiple of 128 that divides hw and is <= target (fallback: full hw)."""
    if hw % 128 != 0:
        return hw                       # full-dim block satisfies the (8,128) rule
    if batch == 1 and hw >= 256:
        # keep >= 2 grid steps so both v7x TensorCores have work
        target = min(target, max(128, (hw // 2) // 128 * 128))
    t = min(target, hw)
    t -= t % 128
    while t >= 128 and hw % t != 0:
        t -= 128
    return t if t >= 128 else hw


def fpn_denoise_forward(x_nchw, params):
    """x_nchw: (B, 2, H, W) float32 -> (B, 1, H, W) float32."""
    b, c_in, h, w = x_nchw.shape
    hw = h * w

    # Free view: collapse spatial dims; no transpose / pad HBM passes.
    x_view = x_nchw.astype(jnp.float32).reshape(b, c_in, hw)              # (B, 2, HW)

    lane_tile = _pick_lane_tile(hw, b)
    n_token_tiles = hw // lane_tile

    # Weights stay at their natural (tiny) shapes; biases as column vectors.
    w1 = params["w1"].astype(jnp.float32)                                 # (16, 2)
    b1 = params["b1"].astype(jnp.float32).reshape(-1, 1)                  # (16, 1)
    w2 = params["w2"].astype(jnp.float32)                                 # (16, 16)
    b2 = params["b2"].astype(jnp.float32).reshape(-1, 1)                  # (16, 1)
    w3 = params["w3"].astype(jnp.float32)                                 # (16, 16)
    b3 = params["b3"].astype(jnp.float32).reshape(-1, 1)                  # (16, 1)
    w4 = params["w4"].astype(jnp.float32)                                 # (1, 16)
    b4 = params["b4"].astype(jnp.float32).reshape(-1, 1)                  # (1, 1)

    const = lambda bi, ti: (0, 0)   # noqa: E731  (constant-index weight blocks)

    out = pl.pallas_call(
        functools.partial(_fpn_denoise_kernel, slope=SLOPE),
        out_shape=jax.ShapeDtypeStruct((b, 1, hw), jnp.float32),
        grid=(b, n_token_tiles),
        in_specs=[
            # input tile: batch squeezed, channels full (2), lane-dense token tile
            pl.BlockSpec((pl.Squeezed(), c_in, lane_tile), lambda bi, ti: (bi, 0, ti)),
            pl.BlockSpec((16, c_in), const),      # w1
            pl.BlockSpec((16, 1), const),         # b1
            pl.BlockSpec((16, 16), const),        # w2
            pl.BlockSpec((16, 1), const),         # b2
            pl.BlockSpec((16, 16), const),        # w3
            pl.BlockSpec((16, 1), const),         # b3
            pl.BlockSpec((1, 16), const),         # w4
            pl.BlockSpec((1, 1), const),          # b4
        ],
        out_specs=pl.BlockSpec((pl.Squeezed(), 1, lane_tile), lambda bi, ti: (bi, 0, ti)),
        compiler_params=pltpu.CompilerParams(
            dimension_semantics=("parallel", "parallel")),
    )(x_view, w1, b1, w2, b2, w3, b3, w4, b4)

    return out.reshape(b, 1, h, w)    # free reshape back to NCHW


# ----------------------------- pure-JAX reference (for correctness check) -------------

def _ref_forward(x, p):
    def lrelu(v):
        return jnp.where(v >= 0.0, v, SLOPE * v)
    hcur = x
    for wk, bk in (("w1", "b1"), ("w2", "b2"), ("w3", "b3"), ("w4", "b4")):
        hcur = jnp.einsum("bchw,oc->bohw", hcur, p[wk]) + p[bk][None, :, None, None]
        hcur = lrelu(hcur)
    return hcur


# ----------------------------- deterministic params + run -----------------------------

if __name__ == "__main__":
    key = jax.random.PRNGKey(0)
    keys = jax.random.split(key, 9)

    def nrm(k, shape, scale=0.1):
        return scale * jax.random.normal(k, shape, jnp.float32)

    # PyTorch Conv2d(cout, cin, 1, 1) weights stored as (cout, cin) (== weight[:, :, 0, 0])
    params = {
        "w1": nrm(keys[0], (16, 2)),  "b1": nrm(keys[1], (16,)),
        "w2": nrm(keys[2], (16, 16)), "b2": nrm(keys[3], (16,)),
        "w3": nrm(keys[4], (16, 16)), "b3": nrm(keys[5], (16,)),
        "w4": nrm(keys[6], (1, 16)),  "b4": nrm(keys[7], (1,)),
    }
    x = jax.random.normal(keys[8], (2, 2, 16, 16), jnp.float32)

    fwd = jax.jit(lambda xx: fpn_denoise_forward(xx, params))
    out = fwd(x)
    jax.block_until_ready(out)

    assert out.shape == (2, 1, 16, 16), out.shape
    assert bool(jnp.all(jnp.isfinite(out)))

    ref = _ref_forward(x, params)
    assert bool(jnp.allclose(out, ref, rtol=1e-5, atol=1e-5)), (
        float(jnp.max(jnp.abs(out - ref))))

    print("KERNEL_OK")
</pallas_src>

<mosaic_0001>
module attributes {stable_mosaic.version = 11 : i64} {
  func.func @_fpn_denoise_kernel(%arg0: i32, %arg1: i32, %arg2: memref<1x2x256xf32, #tpu.memory_space<vmem>>, %arg3: memref<16x2xf32, #tpu.memory_space<vmem>>, %arg4: memref<16x1xf32, #tpu.memory_space<vmem>>, %arg5: memref<16x16xf32, #tpu.memory_space<vmem>>, %arg6: memref<16x1xf32, #tpu.memory_space<vmem>>, %arg7: memref<16x16xf32, #tpu.memory_space<vmem>>, %arg8: memref<16x1xf32, #tpu.memory_space<vmem>>, %arg9: memref<1x16xf32, #tpu.memory_space<vmem>>, %arg10: memref<1x1xf32, #tpu.memory_space<vmem>>, %arg11: memref<1x1x256xf32, #tpu.memory_space<vmem>>) attributes {dimension_semantics = [#tpu.dimension_semantics<parallel>, #tpu.dimension_semantics<parallel>], iteration_bounds = array<i64: 2, 1>, scalar_prefetch = 0 : i64, scratch_operands = 0 : i64, tpu.core_type = #tpu.core_type<tc>, window_params = [{transform_indices = @transform_0, window_bounds = array<i64: 1, 2, 256>}, {pipeline_mode = #tpu.pipeline_mode<synchronous>, transform_indices = @transform_1, window_bounds = array<i64: 16, 2>}, {pipeline_mode = #tpu.pipeline_mode<synchronous>, transform_indices = @transform_2, window_bounds = array<i64: 16, 1>}, {pipeline_mode = #tpu.pipeline_mode<synchronous>, transform_indices = @transform_3, window_bounds = array<i64: 16, 16>}, {pipeline_mode = #tpu.pipeline_mode<synchronous>, transform_indices = @transform_4, window_bounds = array<i64: 16, 1>}, {pipeline_mode = #tpu.pipeline_mode<synchronous>, transform_indices = @transform_5, window_bounds = array<i64: 16, 16>}, {pipeline_mode = #tpu.pipeline_mode<synchronous>, transform_indices = @transform_6, window_bounds = array<i64: 16, 1>}, {pipeline_mode = #tpu.pipeline_mode<synchronous>, transform_indices = @transform_7, window_bounds = array<i64: 1, 16>}, {pipeline_mode = #tpu.pipeline_mode<synchronous>, transform_indices = @transform_8, window_bounds = array<i64: 1, 1>}, {transform_indices = @transform_9, window_bounds = array<i64: 1, 1, 256>}]} {
    %c0 = arith.constant 0 : index
    %c0_0 = arith.constant 0 : index
    %c0_1 = arith.constant 0 : index
    %0 = vector.load %arg2[%c0, %c0_0, %c0_1] : memref<1x2x256xf32, #tpu.memory_space<vmem>>, vector<1x2x256xf32>
    %1 = vector.shape_cast %0 : vector<1x2x256xf32> to vector<2x256xf32>
    %c0_2 = arith.constant 0 : index
    %c0_3 = arith.constant 0 : index
    %2 = vector.load %arg3[%c0_2, %c0_3] : memref<16x2xf32, #tpu.memory_space<vmem>>, vector<16x2xf32>
    %cst = arith.constant dense<0.000000e+00> : vector<16x256xf32>
    %3 = tpu.matmul %2, %1, %cst {dimension_numbers = #tpu.dot_dimension_numbers<[1], [0], [0], [1], [0, 0, 1, 1], [], []>} : vector<16x2xf32>, vector<2x256xf32>, vector<16x256xf32> -> vector<16x256xf32>
    %c0_4 = arith.constant 0 : index
    %c0_5 = arith.constant 0 : index
    %4 = vector.load %arg4[%c0_4, %c0_5] : memref<16x1xf32, #tpu.memory_space<vmem>>, vector<16x1xf32>
    %5 = vector.broadcast %4 : vector<16x1xf32> to vector<16x256xf32>
    %6 = arith.addf %3, %5 : vector<16x256xf32>
    %cst_6 = arith.constant 1.000000e-01 : f32
    %7 = vector.broadcast %cst_6 : f32 to vector<16x256xf32>
    %8 = arith.mulf %7, %6 : vector<16x256xf32>
    %9 = arith.maximumf %6, %8 : vector<16x256xf32>
    %c0_7 = arith.constant 0 : index
    %c0_8 = arith.constant 0 : index
    %10 = vector.load %arg5[%c0_7, %c0_8] : memref<16x16xf32, #tpu.memory_space<vmem>>, vector<16x16xf32>
    %cst_9 = arith.constant dense<0.000000e+00> : vector<16x256xf32>
    %11 = tpu.matmul %10, %9, %cst_9 {dimension_numbers = #tpu.dot_dimension_numbers<[1], [0], [0], [1], [0, 0, 1, 1], [], []>} : vector<16x16xf32>, vector<16x256xf32>, vector<16x256xf32> -> vector<16x256xf32>
    %c0_10 = arith.constant 0 : index
    %c0_11 = arith.constant 0 : index
    %12 = vector.load %arg6[%c0_10, %c0_11] : memref<16x1xf32, #tpu.memory_space<vmem>>, vector<16x1xf32>
    %13 = vector.broadcast %12 : vector<16x1xf32> to vector<16x256xf32>
    %14 = arith.addf %11, %13 : vector<16x256xf32>
    %cst_12 = arith.constant 1.000000e-01 : f32
    %15 = vector.broadcast %cst_12 : f32 to vector<16x256xf32>
    %16 = arith.mulf %15, %14 : vector<16x256xf32>
    %17 = arith.maximumf %14, %16 : vector<16x256xf32>
    %c0_13 = arith.constant 0 : index
    %c0_14 = arith.constant 0 : index
    %18 = vector.load %arg7[%c0_13, %c0_14] : memref<16x16xf32, #tpu.memory_space<vmem>>, vector<16x16xf32>
    %cst_15 = arith.constant dense<0.000000e+00> : vector<16x256xf32>
    %19 = tpu.matmul %18, %17, %cst_15 {dimension_numbers = #tpu.dot_dimension_numbers<[1], [0], [0], [1], [0, 0, 1, 1], [], []>} : vector<16x16xf32>, vector<16x256xf32>, vector<16x256xf32> -> vector<16x256xf32>
    %c0_16 = arith.constant 0 : index
    %c0_17 = arith.constant 0 : index
    %20 = vector.load %arg8[%c0_16, %c0_17] : memref<16x1xf32, #tpu.memory_space<vmem>>, vector<16x1xf32>
    %21 = vector.broadcast %20 : vector<16x1xf32> to vector<16x256xf32>
    %22 = arith.addf %19, %21 : vector<16x256xf32>
    %cst_18 = arith.constant 1.000000e-01 : f32
    %23 = vector.broadcast %cst_18 : f32 to vector<16x256xf32>
    %24 = arith.mulf %23, %22 : vector<16x256xf32>
    %25 = arith.maximumf %22, %24 : vector<16x256xf32>
    %c0_19 = arith.constant 0 : index
    %c0_20 = arith.constant 0 : index
    %26 = vector.load %arg9[%c0_19, %c0_20] : memref<1x16xf32, #tpu.memory_space<vmem>>, vector<1x16xf32>
    %cst_21 = arith.constant dense<0.000000e+00> : vector<1x256xf32>
    %27 = tpu.matmul %26, %25, %cst_21 {dimension_numbers = #tpu.dot_dimension_numbers<[1], [0], [0], [1], [0, 0, 1, 1], [], []>} : vector<1x16xf32>, vector<16x256xf32>, vector<1x256xf32> -> vector<1x256xf32>
    %c0_22 = arith.constant 0 : index
    %c0_23 = arith.constant 0 : index
    %28 = vector.load %arg10[%c0_22, %c0_23] : memref<1x1xf32, #tpu.memory_space<vmem>>, vector<1x1xf32>
    %29 = vector.broadcast %28 : vector<1x1xf32> to vector<1x256xf32>
    %30 = arith.addf %27, %29 : vector<1x256xf32>
    %cst_24 = arith.constant 1.000000e-01 : f32
    %31 = vector.broadcast %cst_24 : f32 to vector<1x256xf32>
    %32 = arith.mulf %31, %30 : vector<1x256xf32>
    %33 = arith.maximumf %30, %32 : vector<1x256xf32>
    %c0_25 = arith.constant 0 : index
    %c0_26 = arith.constant 0 : index
    %c0_27 = arith.constant 0 : index
    %34 = vector.load %arg11[%c0_25, %c0_26, %c0_27] : memref<1x1x256xf32, #tpu.memory_space<vmem>>, vector<1x1x256xf32>
    %35 = vector.shape_cast %34 : vector<1x1x256xf32> to vector<1x256xf32>
    %36 = vector.shape_cast %33 : vector<1x256xf32> to vector<1x1x256xf32>
    tpu.vector_store %arg11[%c0_25, %c0_26, %c0_27], %36 {strides = array<i32>} : memref<1x1x256xf32, #tpu.memory_space<vmem>>, vector<1x1x256xf32>,
    return
  }
  func.func @transform_0(%arg0: i32, %arg1: i32) -> (i32, i32, i32) {
    %c0_i32 = arith.constant 0 : i32
    %c0_i32_0 = arith.constant 0 : i32
    return %arg0, %c0_i32, %arg1 : i32, i32, i32
  }
  func.func @transform_1(%arg0: i32, %arg1: i32) -> (i32, i32) {
    %c0_i32 = arith.constant 0 : i32
    %c0_i32_0 = arith.constant 0 : i32
    %c0_i32_1 = arith.constant 0 : i32
    return %c0_i32, %c0_i32_0 : i32, i32
  }
  func.func @transform_2(%arg0: i32, %arg1: i32) -> (i32, i32) {
    %c0_i32 = arith.constant 0 : i32
    %c0_i32_0 = arith.constant 0 : i32
    %c0_i32_1 = arith.constant 0 : i32
    return %c0_i32, %c0_i32_0 : i32, i32
  }
  func.func @transform_3(%arg0: i32, %arg1: i32) -> (i32, i32) {
    %c0_i32 = arith.constant 0 : i32
    %c0_i32_0 = arith.constant 0 : i32
    %c0_i32_1 = arith.constant 0 : i32
    return %c0_i32, %c0_i32_0 : i32, i32
  }
  func.func @transform_4(%arg0: i32, %arg1: i32) -> (i32, i32) {
    %c0_i32 = arith.constant 0 : i32
    %c0_i32_0 = arith.constant 0 : i32
    %c0_i32_1 = arith.constant 0 : i32
    return %c0_i32, %c0_i32_0 : i32, i32
  }
  func.func @transform_5(%arg0: i32, %arg1: i32) -> (i32, i32) {
    %c0_i32 = arith.constant 0 : i32
    %c0_i32_0 = arith.constant 0 : i32
    %c0_i32_1 = arith.constant 0 : i32
    return %c0_i32, %c0_i32_0 : i32, i32
  }
  func.func @transform_6(%arg0: i32, %arg1: i32) -> (i32, i32) {
    %c0_i32 = arith.constant 0 : i32
    %c0_i32_0 = arith.constant 0 : i32
    %c0_i32_1 = arith.constant 0 : i32
    return %c0_i32, %c0_i32_0 : i32, i32
  }
  func.func @transform_7(%arg0: i32, %arg1: i32) -> (i32, i32) {
    %c0_i32 = arith.constant 0 : i32
    %c0_i32_0 = arith.constant 0 : i32
    %c0_i32_1 = arith.constant 0 : i32
    return %c0_i32, %c0_i32_0 : i32, i32
  }
  func.func @transform_8(%arg0: i32, %arg1: i32) -> (i32, i32) {
    %c0_i32 = arith.constant 0 : i32
    %c0_i32_0 = arith.constant 0 : i32
    %c0_i32_1 = arith.constant 0 : i32
    return %c0_i32, %c0_i32_0 : i32, i32
  }
  func.func @transform_9(%arg0: i32, %arg1: i32) -> (i32, i32, i32) {
    %c0_i32 = arith.constant 0 : i32
    %c0_i32_0 = arith.constant 0 : i32
    return %arg0, %c0_i32, %arg1 : i32, i32, i32
  }
}

</mosaic_0001>

<bundles_post_ra>
// kernel: _lambda_.1
= control target key start
LH: loop header
LB: loop body
LE: loop exit
PB: predicated region body
PF: predicated region fallthrough
CT: control target
= control target key end

     0   :  { %s1241_s0 = inlined_call_operand.vmem [shape: f32[2,2,256], index: 0, kind: input, shape index: {}]   ;;  %s1242_s1 = inlined_call_operand.vmem [shape: f32[16,2], index: 1, kind: input, shape index: {}]   ;;  %s1243_s2 = inlined_call_operand.vmem [shape: f32[16,1], index: 2, kind: input, shape index: {}]   ;;  %s1244_s3 = inlined_call_operand.vmem [shape: f32[16,16], index: 3, kind: input, shape index: {}]   ;;  %s1245_s4 = inlined_call_operand.vmem [shape: f32[16,1], index: 4, kind: input, shape index: {}]   ;;  %s1246_s5 = inlined_call_operand.vmem [shape: f32[16,16], index: 5, kind: input, shape index: {}]   ;;  %s1247_s6 = inlined_call_operand.hbm [shape: f32[16,1], index: 6, kind: input, shape index: {}]   ;;  %s1248_s7 = inlined_call_operand.vmem [shape: f32[1,16], index: 7, kind: input, shape index: {}]   ;;  %s1249_s8 = inlined_call_operand.<no memory space> [shape: f32[1,1], index: 8, kind: input, shape index: {}]   ;;  %s1250_s9 = inlined_call_operand.vmem [shape: f32[2,1,256], index: 9, kind: output, shape index: {}]  }
   0x1   :  { %v14_v0 = vstv %s1249_s8 }
   0x2   :  { %15 = vst [vmem:[#allocation2] sm:$0x1] %v14_v0 }
   0x3   :  { %16 = vsyncpa [#allocation4], 0  ;;  %s1116_s11 = smov 0   ;;  %s1118_s12 = smov 0  }
   0x4   :  { %s1120_s13 = smov 0  }
   0x5 LB: > { %s924_s8 = sadd.s32 4294967295, %s1055_s13   ;;  %s34_s14 = sadd.s32 1, %s1051_s12  ;;  %s1055_s13 = sphi %s1120_s13, %s22_s13   ;;  %s1051_s12 = sphi %s1118_s12, %s1260_s12   ;;  %s1047_s11 = sphi %s1116_s11, %s1259_s11  }
   0x6   : > { %p36_p0 = scmp.ge.s32.totalorder %s34_s14, 2  ;;  %p926_p1 = scmp.ge.s32.totalorder %s1055_s13, 1 }
   0x7   : > { %p263_p2 = scmp.lt.s32.totalorder %s1055_s13, 3  ;;  %p1141_p4 = scmp.eq.s32.totalorder %s924_s8, 0 }
   0x8   : > { %s1262_s14 = smov (%p36_p0, %s34_s14), 0  ;;  %s1057_s17 = smov [#allocation3]  }
   0x9   : > { %p1137_p3 = pnand %p926_p1, %p263_p2  ;;  %s290_s18 = sshll.u32 %s1057_s17, 4  ;;  %s291_s18 = int_to_ptr.vmem [resolvable:$true] %s290_s18 }
   0xa   : > { %s1255_s16 = scalar_select %p1141_p4, 1, 0 }
   0xb   : > { %s1254_s15 = scalar_select %p1137_p3, 1, 0 }
   0xc   : > { %p963_p5 = pneg %p1137_p3  ;;  %s1001_s22 = scalar_lea.hbm %s1247_s6, 256 }
   0xd   : > { %p1002_p7 = scmp.ne.s32.totalorder %s1247_s6, %s1001_s22  ;;  %p1008_p11 = scmp.lt.u32.totalorder %s1001_s22, %s1247_s6 }
   0xe   : > { %p1149_p6 = pnand %p1141_p4, %p963_p5 }
  0x10   : > { %p1003_p8 = pneg %p1149_p6 }
  0x12   : > { %p1004_p9 = pnand %p1003_p8, %p1002_p7 }
  0x14   : > { %p1005_p10 = pneg %p1004_p9 }
  0x16   : > { %p1010_p12 = pnand %p1008_p11, %p1005_p10 }
  0x18   : > { %1013 = shalt.err (!%p1010_p12)
}
  0x19   : > { %s1014_s27 = scalar_lea.vmem %s291_s18, 256  ;;  %p1022_p2 = scmp.lt.s32.totalorder %s291_s18, %s291_s18 }
  0x1a   : > { %p1015_p13 = scmp.ne.s32.totalorder %s291_s18, %s1014_s27  ;;  %p1023_p5 = scmp.lt.s32.totalorder %s1014_s27, %s1014_s27 }
  0x1c   : > { %p1017_p0 = pnand %p1015_p13, %p1003_p8  ;;  %p1024_p4 = por %p1023_p5, %p1022_p2 }
  0x1e   : > { %p1018_p1 = pneg %p1017_p0 }
  0x20   : > { %p1025_p3 = pnand %p1024_p4, %p1018_p1 }
  0x22   : > { %1028 = shalt.err (!%p1025_p3)
}
  0x23   : > { %s1058_s28 = smov 128   ;;  %s1059_s29 = smov 8  }
  0x24   : > { %966 = dma.hbm_to_vmem [thread:$0]  (!%p1149_p6), %s1247_s6, 256, %s291_s18, [#allocation4], %s1058_s28, %s1058_s28, %s1059_s29  }
  0x25   : > { %p1257_p7 = scmp.ne.s32.totalorder %s1254_s15, 0 }
  0x26   : > { %p1258_p9 = scmp.ne.s32.totalorder (!%p1257_p7), %s1255_s16, 0 }
  0x27   : > { %325 = sbr.rel (%p1257_p7) target bundleno = 970 (0x3ca), region = 56 }
  0x2e   : > { %1042 = dma.done.wait (%p1258_p9), [#allocation4], 256  }
  0x2f   : > { %1044 = vsyncadd (%p1258_p9), [#allocation4], 4294967040  ;;  %p369_p3 = scmp.lt.s32.totalorder %s1047_s11, 1  ;;  %v1060_v1 = vmov 0.0   ;;  %v1061_v2 = vmov 0   ;;  %vm418_vm0 = vcmask 1041408  }
  0x30   : > { %487 = vmatprep.mubr.f32.mxu0 %v1060_v1  ;;  %593 = vmatprep.mubr.f32.mxu1 %v1060_v1  ;;  %v390_v5 = vld [vmem:[%s1243_s2] sm:$0xff]  ;;  %vm411_vm1 = vcmask 15360   ;;  %v391_v7 = vld [vmem:[%s1243_s2 + $0x8] sm:$0xff]  ;;  %vm522_vm2 = vcmask 130048  }
  0x31   : > { %s1264_s11 = smov (!%p369_p3, %s1047_s11), 1  ;;  %999 = vset.pattern.permute.xlu0 %v1061_v2  ;;  %1000 = vset.pattern.permute.xlu1 %v1061_v2  ;;  %v388_v6 = vld [vmem:[%s1242_s1] sm:$0xff]  ;;  %v389_v8 = vld [vmem:[%s1242_s1 + $0x8] sm:$0xff] }
  0x32   : > { %s946_s8 = sshll.u32 %s1264_s11, 2  ;;  %394 = vperm.xlu0 %999, %v390_v5   ;;  %v616_v9 = vld [vmem:[#allocation3] sm:$0xff]  ;;  %v720_v10 = vld [vmem:[#allocation2] sm:$0x1]  ;;  %v617_v13 = vld [vmem:[#allocation3 + $0x8] sm:$0xff]  ;;  %s933_s22 = sshll.u32 %s1264_s11, 1 }
  0x33   : > { %s376_s16 = scalar_lea.vmem %s1241_s0, %s946_s8  ;;  %v510_v11 = vld [vmem:[%s1245_s4] sm:$0xff]  ;;  %v511_v12 = vld [vmem:[%s1245_s4 + $0x8] sm:$0xff]  ;;  %s385_s25 = scalar_lea.vmem %s1250_s9, %s933_s22 }
  0x34   : > { %v934_v3 = vld.sshfl [vmem:[%s376_s16] sm:$0x33 pattern:$0x76325410]  ;;  %514 = vperm.xlu1 %1000, %v510_v11   ;;  %v509_v35 = vld [vmem:[%s1244_s3 + $0x8] sm:$0xff] }
  0x35   : > { %v410_v4 = vcombine.high %v934_v3, %v934_v3  ;;  %v508_v34 = vld [vmem:[%s1244_s3] sm:$0xff]  ;;  %v615_v57 = vld [vmem:[%s1246_s5 + $0x8] sm:$0xff] }
  0x36   : > { %399 = vperm.xlu0 %999, %v391_v7   ;;  %v614_v56 = vld [vmem:[%s1246_s5] sm:$0xff] }
  0x37   : > { %935 = vmatprep.subr.msk.mxu0 %vm418_vm0, %v410_v4 }
  0x38   : > { %936 = vmatpush1.msk.msra.mxu0 %vm418_vm0, %v934_v3  ;;  %519 = vperm.xlu1 %1000, %v511_v12  }
  0x39   : > { %937 = vmatmul.mubr.msk.f32.vlgmr.msra.gmra.mrb[0].mxu0 %vm411_vm1, %v388_v6 }
  0x3a   : > { %493 = vmatprep.mubr.f32.mxu0 %v1060_v1  ;;  %620 = vperm.xlu0 %999, %v616_v9  }
  0x3c   : > { %625 = vperm.xlu1 %1000, %v617_v13  }
  0x3d   : > { %938 = vmatmul.mubr.msk.f32.gmra.mrb[2].mxu0 %vm411_vm1, %v389_v8 }
  0x3e   : > { %698 = vmatprep.mubr.f32.mxu0 %v1060_v1  ;;  %723 = vperm.xlu0 %999, %v720_v10  }
  0xb1   : > { %v395_v14 = vpop.permute.xlu0 %394 }
  0xb3   : > { %v515_v36 = vpop.permute.xlu1 %514 }
  0xb5   : > { %v400_v19 = vpop.permute.xlu0 %399 }
  0xb7   : > { %v520_v41 = vpop.permute.xlu1 %519 }
  0xb9   : > { %v621_v58 = vpop.permute.xlu0 %620 }
  0xbb   : > { %v626_v63 = vpop.permute.xlu1 %625 }
 0x10c   : > { %v489_v15 = vpop.f32.mrb[0].mxu0 }
 0x10d   : > { %v490_v16 = vadd.f32 %v489_v15, %v395_v14  ;;  %v491_v17 = vpop.f32.mrb[1].mxu0  ;;  %v726_v15 = vlaneseq }
 0x10e   : > { %v492_v18 = vadd.f32 %v491_v17, %v395_v14  ;;  %v719_v14 = vld [vmem:[%s1248_s7] sm:$0x1] }
 0x10f   : > { %v500_v21 = vmul.f32 0.1, %v490_v16  ;;  %vm828_vm3 = vcmp.lt.s32.totalorder %v726_v15, 256 }
 0x110   : > { %v495_v20 = vpop.f32.mrb[2].mxu0  ;;  %v501_v24 = vmul.f32 0.1, %v492_v18 }
 0x111   : > { %v496_v22 = vadd.f32 %v495_v20, %v400_v19  ;;  %v497_v23 = vpop.f32.mrb[3].mxu0  ;;  %v504_v28 = vmax.f32 %v490_v16, %v500_v21  ;;  %v727_v16 = vshrl.u32 %v726_v15, 7 }
 0x112   : > { %v498_v25 = vadd.f32 %v497_v23, %v400_v19  ;;  %v505_v30 = vmax.f32 %v492_v18, %v501_v24  ;;  %v724_v18 = vpop.permute.xlu0 %723  ;;  %v1062_v19 = vmov 1966171168  }
 0x113   : > { %v502_v26 = vmul.f32 0.1, %v496_v22  ;;  %v728_v17 = vsub.s32 0, %v727_v16  ;;  %v812_v20 = vunpack.c.l.s4 %v1062_v19 }
 0x114   : > { %v503_v27 = vmul.f32 0.1, %v498_v25 }
 0x115   : > { %v506_v29 = vmax.f32 %v496_v22, %v502_v26  ;;  %v729_v21 = vrot.slane %v724_v18, %v728_v17 }
 0x116   : > { %v507_v31 = vmax.f32 %v498_v25, %v503_v27  ;;  %v813_v25 = vunpack.c.0.s8 %v812_v20 }
 0x117   : > { %v949_v32 = vpack.c.bf16 %v506_v29, %v504_v28 }
 0x118   : > { %v947_v33 = vpack.c.bf16 %v507_v31, %v505_v30  ;;  %v816_v30 = vsub.s32 %v813_v25, %v727_v16 }
 0x11a   : > { %948 = vmatprep.subr.bf16.mxu1 %v947_v33 }
 0x11b   : > { %950 = vmatpush1.bf16.msra.mxu1 %v949_v32 }
 0x11e   : > { %939 = vmatmul.mubr.msk.f32.vlgmr.msra.gmra.mrb[0].mxu1 %vm522_vm2, %v508_v34 }
 0x11f   : > { %599 = vmatprep.mubr.f32.mxu1 %v1060_v1 }
 0x122   : > { %940 = vmatmul.mubr.msk.f32.gmra.mrb[2].mxu1 %vm522_vm2, %v509_v35 }
 0x123   : > { %797 = vmatprep.mubr.f32.mxu1 %v1060_v1 }
 0x1f1   : > { %v595_v37 = vpop.f32.mrb[0].mxu1 }
 0x1f2   : > { %v596_v38 = vadd.f32 %v595_v37, %v515_v36  ;;  %v597_v39 = vpop.f32.mrb[1].mxu1 }
 0x1f3   : > { %v598_v40 = vadd.f32 %v597_v39, %v515_v36 }
 0x1f4   : > { %v606_v43 = vmul.f32 0.1, %v596_v38 }
 0x1f5   : > { %v601_v42 = vpop.f32.mrb[2].mxu1  ;;  %v607_v46 = vmul.f32 0.1, %v598_v40 }
 0x1f6   : > { %v602_v44 = vadd.f32 %v601_v42, %v520_v41  ;;  %v603_v45 = vpop.f32.mrb[3].mxu1  ;;  %v610_v50 = vmax.f32 %v596_v38, %v606_v43 }
 0x1f7   : > { %v604_v47 = vadd.f32 %v603_v45, %v520_v41  ;;  %v611_v52 = vmax.f32 %v598_v40, %v607_v46 }
 0x1f8   : > { %v608_v48 = vmul.f32 0.1, %v602_v44 }
 0x1f9   : > { %v609_v49 = vmul.f32 0.1, %v604_v47 }
 0x1fa   : > { %v612_v51 = vmax.f32 %v602_v44, %v608_v48 }
 0x1fb   : > { %v613_v53 = vmax.f32 %v604_v47, %v609_v49 }
 0x1fc   : > { %v953_v54 = vpack.c.bf16 %v612_v51, %v610_v50 }
 0x1fd   : > { %v951_v55 = vpack.c.bf16 %v613_v53, %v611_v52 }
 0x1ff   : > { %952 = vmatprep.subr.bf16.mxu0 %v951_v55 }
 0x200   : > { %954 = vmatpush1.bf16.msra.mxu0 %v953_v54 }
 0x203   : > { %941 = vmatmul.mubr.msk.f32.vlgmr.msra.gmra.mrb[4].mxu0 %vm522_vm2, %v614_v56 }
 0x204   : > { %704 = vmatprep.mubr.f32.mxu0 %v1060_v1 }
 0x207   : > { %942 = vmatmul.mubr.msk.f32.gmra.mrb[6].mxu0 %vm522_vm2, %v615_v57 }
 0x2d6   : > { %v700_v59 = vpop.f32.mrb[4].mxu0 }
 0x2d7   : > { %v701_v60 = vadd.f32 %v700_v59, %v621_v58  ;;  %v702_v61 = vpop.f32.mrb[5].mxu0 }
 0x2d8   : > { %v703_v62 = vadd.f32 %v702_v61, %v621_v58 }
 0x2d9   : > { %v711_v2 = vmul.f32 0.1, %v701_v60 }
 0x2da   : > { %v706_v0 = vpop.f32.mrb[6].mxu0  ;;  %v712_v5 = vmul.f32 0.1, %v703_v62 }
 0x2db   : > { %v707_v3 = vadd.f32 %v706_v0, %v626_v63  ;;  %v708_v4 = vpop.f32.mrb[7].mxu0  ;;  %v715_v8 = vmax.f32 %v701_v60, %v711_v2 }
 0x2dc   : > { %v709_v6 = vadd.f32 %v708_v4, %v626_v63  ;;  %v716_v10 = vmax.f32 %v703_v62, %v712_v5 }
 0x2dd   : > { %v713_v7 = vmul.f32 0.1, %v707_v3 }
 0x2de   : > { %v714_v1 = vmul.f32 0.1, %v709_v6 }
 0x2df   : > { %v717_v9 = vmax.f32 %v707_v3, %v713_v7 }
 0x2e0   : > { %v718_v11 = vmax.f32 %v709_v6, %v714_v1 }
 0x2e1   : > { %v957_v12 = vpack.c.bf16 %v717_v9, %v715_v8 }
 0x2e2   : > { %v955_v13 = vpack.c.bf16 %v718_v11, %v716_v10 }
 0x2e4   : > { %956 = vmatprep.subr.bf16.mxu1 %v955_v13 }
 0x2e5   : > { %958 = vmatpush1.bf16.msra.mxu1 %v957_v12 }
 0x2e8   : > { %943 = vmatmul.mubr.msk.f32.vlgmr.msra.gmra.mrb[4].mxu1 %vm522_vm2, %v719_v14 }
 0x3bb   : > { %v799_v22 = vpop.f32.mrb[4].mxu1 }
 0x3bc   : > { %v800_v23 = vadd.f32 %v799_v22, %v729_v21  ;;  %v801_v24 = vpop.f32.mrb[5].mxu1 }
 0x3bd   : > { %v802_v26 = vadd.f32 %v801_v24, %v729_v21 }
 0x3be   : > { %v804_v27 = vmul.f32 0.1, %v800_v23 }
 0x3bf   : > { %v805_v28 = vmul.f32 0.1, %v802_v26 }
 0x3c0   : > { %v806_v29 = vmax.f32 %v800_v23, %v804_v27 }
 0x3c1   : > { %v807_v31 = vmax.f32 %v802_v26, %v805_v28 }
 0x3c3   : > { %v810_v32 = vcombine.low %v806_v29, %v807_v31 }
 0x3c5   : > { %v817_v33 = vrot.slane %v810_v32, %v816_v30 }
 0x3c7   : > { %v824_v34 = vrot.slane %v817_v33, %v816_v30 }
 0x3c9   : > { %830 = vst.msk [vmem:[%s385_s25] sm:$0x3] %vm828_vm3, %v824_v34 }
 0x3ca PF: > { %s22_s13 = sadd.s32 1, %s1055_s13   ;;  %s1259_s11 = smov %s1051_s12 }
 0x3cb   : > { %p19_p4 = scmp.ge.s32.totalorder %s22_s13, 4   ;;  %s1260_s12 = smov %s1262_s14 }
 0x3cd   :  { %21 = sbr.rel (!%p19_p4) target bundleno = 5 (0x5), region = 91 }
 0x3d4   :  { %859 = vsyncpa [#allocation4], 1 }
 0x3d5   :  { %861 = vsyncpa [#allocation4 + $0x1], 1 }

</bundles_post_ra>
